<compile_context>
chip_gen: v7x
topology: tpu7x:2x2x1
jax: 0.10.0
libtpu: 0.0.40
codegen_flags: <defaults>
</compile_context>

<pallas_src>
import jax
import jax.numpy as jnp
import numpy as np
from jax import lax
from jax.experimental import pallas as pl
from jax.experimental.pallas import tpu as pltpu


# --------------------------- in-kernel helpers ------------------------------

def _abs_exp_decay_tile(d, row_base, col_base, rows, cols):
    """exp(|i - j| * d) for i in [row_base, row_base+rows), j in [col_base, col_base+cols).

    Rank-1 separable factors (O(rows + cols) exps) re-centred at the row-tile
    base, combined with jnp.minimum:
        exp(|i-j|*d) = min(exp((i-j)*d), exp((j-i)*d))      (since d < 0)
    The row factors ri / 1/ri have exponents bounded by rows*|d|, so they are
    always finite and nonzero; any inf/0 produced by the column factors far
    from the diagonal lives only in the discarded branch of the min (never
    0*inf = NaN), and the selected branch matches the reference value up to
    f32 underflow (~1e-38).
    """
    i_rel = lax.broadcasted_iota(jnp.int32, (rows, 1), 0).astype(jnp.float32)
    j_rel = (lax.broadcasted_iota(jnp.int32, (1, cols), 1)
             + (col_base - row_base)).astype(jnp.float32)
    ri, iri = jnp.exp(i_rel * d), jnp.exp(-(i_rel * d))
    cj, icj = jnp.exp(j_rel * d), jnp.exp(-(j_rel * d))
    return jnp.minimum(ri * icj, iri * cj)


# ----------------------------- Pallas kernels ------------------------------

def _sincos_kernel(angle_ref, sin_ref, cos_ref):
    # angle_ref: (1, A); outputs: (TS, A) row tiles of sin/cos(index * angle).
    TS, A = sin_ref.shape
    r0 = pl.program_id(0) * TS
    idx = (lax.broadcasted_iota(jnp.int32, (TS, A), 0) + r0).astype(jnp.float32)
    phase = idx * angle_ref[...]
    sin_ref[...] = jnp.sin(phase)
    cos_ref[...] = jnp.cos(phase)


def _decay_mask_kernel(decay_ref, inv_scale_ref, mask_ref):
    # grid = (head, row_tile, col_tile); out block (1, TL, TC).
    h, r, c = pl.program_id(0), pl.program_id(1), pl.program_id(2)
    _, TL, TC = mask_ref.shape
    d = decay_ref[0, h]                                   # scalar from SMEM
    m = _abs_exp_decay_tile(d, r * TL, c * TC, TL, TC)    # raw exp(|i-j|*d)
    # Normalization 1/sqrt(rowsum) comes precomputed (closed-form geometric
    # series, O(H*L) in the wrapper) -> no cross-lane reduce, column tiling OK.
    mask_ref[0] = (m * inv_scale_ref[0]).astype(mask_ref.dtype)


def _chunk_decay_kernel(decay_ref, inner_ref, aux_ref):
    # One head per grid step.  Produces every per-chunk quantity the
    # chunkwise-recurrent branch needs in a single pass.
    h = pl.program_id(0)
    C = inner_ref.shape[1]
    d = decay_ref[0, h]

    raw = _abs_exp_decay_tile(d, 0, 0, C, C)               # (C, C), values <= 1
    rowsum = jnp.sum(raw, axis=-1, keepdims=True)          # (C, 1)
    inner_ref[0] = (raw * lax.rsqrt(rowsum)).astype(inner_ref.dtype)

    # Lane-dense aux slab rows: [query_inner_decay | value_inner_decay | cross].
    j = lax.broadcasted_iota(jnp.int32, (1, C), 1).astype(jnp.float32)
    last_row = jnp.exp((float(C - 1) - j) * d)             # mask[-1, :], (1, C)
    last_sum = jnp.sum(last_row, axis=-1, keepdims=True)   # (1, 1)
    # raw is symmetric, so the rowsum indexed along the lane axis is just a
    # sublane reduce of the same tile (avoids transposing the (C,1) rowsum).
    rowsum_lane = jnp.sum(raw, axis=0, keepdims=True)      # (1, C)
    qexp = jnp.exp((j + 1.0) * d)                          # exp(d*(b+1)), (1, C)
    qid = qexp * last_sum * lax.rsqrt(rowsum_lane)         # (1, C)
    vid = last_row / last_sum                              # (1, C)
    cross = qexp * last_row                                # == exp(C*d) per lane
    aux_ref[0] = jnp.concatenate([qid, vid, cross], axis=0)


# ------------------------------ kernel wrappers -----------------------------

def _mask_tiles(L):
    # Tiles are either the full dim (always legal) or an aligned constant,
    # so ragged L only costs a masked edge tile; VMEM use is independent of L.
    TL = L if L <= 256 else 256     # sublane axis: 256 % 8 == 0
    TC = L if L <= 512 else 512     # lane axis:    512 % 128 == 0
    return TL, TC


def _sincos(slen, angle):
    A = angle.shape[0]
    angle2d = angle.reshape(1, A).astype(jnp.float32)
    TS = slen if slen <= 512 else 512
    return pl.pallas_call(
        _sincos_kernel,
        out_shape=(jax.ShapeDtypeStruct((slen, A), jnp.float32),
                   jax.ShapeDtypeStruct((slen, A), jnp.float32)),
        grid=(pl.cdiv(slen, TS),),
        in_specs=[pl.BlockSpec((1, A), lambda i: (0, 0))],
        out_specs=(pl.BlockSpec((TS, A), lambda i: (i, 0)),
                   pl.BlockSpec((TS, A), lambda i: (i, 0))),
        compiler_params=pltpu.CompilerParams(
            dimension_semantics=("parallel",)),
    )(angle2d)


def _decay_mask(L, decay, out_dtype=jnp.float32):
    # out_dtype=jnp.bfloat16 halves the HBM writeback on this writeback-bound
    # kernel (math stays f32 in-kernel); f32 default matches the torch module.
    H = decay.shape[0]
    d = decay.astype(jnp.float32)

    # Closed-form geometric row sum (d < 0):
    #   sum_{j<L} exp(|i-j|*d) = (expm1((i+1)*d) + expm1((L-i)*d)) / expm1(d) - 1
    # O(H*L) work done once in XLA; streamed into the kernel as (1, TL, 1).
    i = jnp.arange(L, dtype=jnp.float32)
    num = (jnp.expm1((i[None, :] + 1.0) * d[:, None])
           + jnp.expm1((L - i[None, :]) * d[:, None]))
    rowsum = num / jnp.expm1(d)[:, None] - 1.0
    inv_scale = lax.rsqrt(rowsum).reshape(H, L, 1)

    decay2d = d.reshape(1, H)
    TL, TC = _mask_tiles(L)
    grid = (H, pl.cdiv(L, TL), pl.cdiv(L, TC))
    return pl.pallas_call(
        _decay_mask_kernel,
        out_shape=jax.ShapeDtypeStruct((H, L, L), out_dtype),
        grid=grid,
        in_specs=[pl.BlockSpec(memory_space=pltpu.MemorySpace.SMEM),
                  pl.BlockSpec((1, TL, 1), lambda h, r, c: (h, r, 0))],
        out_specs=pl.BlockSpec((1, TL, TC), lambda h, r, c: (h, r, c)),
        compiler_params=pltpu.CompilerParams(
            dimension_semantics=("parallel", "parallel", "parallel")),
    )(decay2d, inv_scale)


def _chunk_decay(C, decay):
    H = decay.shape[0]
    decay2d = decay.reshape(1, H).astype(jnp.float32)
    inner, aux = pl.pallas_call(
        _chunk_decay_kernel,
        out_shape=(jax.ShapeDtypeStruct((H, C, C), jnp.float32),
                   jax.ShapeDtypeStruct((H, 3, C), jnp.float32)),
        grid=(H,),
        in_specs=[pl.BlockSpec(memory_space=pltpu.MemorySpace.SMEM)],
        out_specs=(pl.BlockSpec((1, C, C), lambda h: (h, 0, 0)),
                   pl.BlockSpec((1, 3, C), lambda h: (h, 0, 0))),
        compiler_params=pltpu.CompilerParams(
            dimension_semantics=("parallel",)),
    )(decay2d)
    # Tiny reshapes in the wrapper restore the torch-module output layout.
    query_inner_decay = aux[:, 0, :, None]      # (H, C, 1)
    value_inner_decay = aux[:, 1, :, None]      # (H, C, 1)
    cross_decay = aux[:, 2, :1, None]           # (H, 1, 1)
    return inner, cross_decay, query_inner_decay, value_inner_decay


# --------------------------- RetNetRelPos.forward ---------------------------

def init_params(embed_dim, heads):
    # angle = 1 / 10000 ** linspace(0, 1, D/H/2), each element repeated twice
    half = embed_dim // heads // 2
    base = 1.0 / (10000.0 ** np.linspace(0.0, 1.0, half))
    angle = np.repeat(base, 2)  # == unsqueeze(-1).repeat(1, 2).flatten()
    decay = np.log(1.0 - 2.0 ** (-5.0 - np.arange(heads, dtype=np.float64)))
    return jnp.asarray(angle, jnp.float32), jnp.asarray(decay, jnp.float32)


def retnet_rel_pos(slen, angle, decay, recurrent_chunk_size,
                   activate_recurrent=False, chunkwise_recurrent=False,
                   mask_dtype=jnp.float32):
    if activate_recurrent:
        # tiny per-element vectors -> plain JAX glue (matches torch branch)
        sin = jnp.sin(angle * (slen - 1))
        cos = jnp.cos(angle * (slen - 1))
        return (sin, cos), jnp.exp(decay)
    elif chunkwise_recurrent:
        sin, cos = _sincos(slen, angle)
        inner_mask, cross_decay, query_inner_decay, value_inner_decay = (
            _chunk_decay(recurrent_chunk_size, decay))
        return (sin, cos), (inner_mask, cross_decay, query_inner_decay,
                            value_inner_decay)
    else:
        sin, cos = _sincos(slen, angle)
        mask = _decay_mask(slen, decay, out_dtype=mask_dtype)
        return (sin, cos), mask


# ----------------------------------- main -----------------------------------

if __name__ == "__main__":
    embed_dim, heads, chunk, slen = 32, 4, 4, 8
    angle, decay = init_params(embed_dim, heads)
    # forward() only takes an integer sequence length; key kept for convention.
    _ = jax.random.PRNGKey(0)

    # ---------------- default (parallel) path: main Pallas kernels ----------
    (sin, cos), mask = retnet_rel_pos(slen, angle, decay, chunk)
    jax.block_until_ready((sin, cos, mask))

    # reference in plain jnp (mirrors the torch code exactly)
    index = jnp.arange(slen, dtype=jnp.float32)
    sin_ref = jnp.sin(index[:, None] * angle[None, :])
    cos_ref = jnp.cos(index[:, None] * angle[None, :])
    m_ref = jnp.exp(jnp.abs(index[:, None] - index[None, :])
                    * decay[:, None, None])
    m_ref = m_ref / jnp.sqrt(m_ref.sum(-1, keepdims=True))
    np.testing.assert_allclose(np.asarray(sin), np.asarray(sin_ref),
                               rtol=1e-5, atol=1e-5)
    np.testing.assert_allclose(np.asarray(cos), np.asarray(cos_ref),
                               rtol=1e-5, atol=1e-5)
    np.testing.assert_allclose(np.asarray(mask), np.asarray(m_ref),
                               rtol=1e-5, atol=1e-5)

    # bf16 writeback path (halved HBM traffic); looser tolerance for bf16.
    mask_bf16 = _decay_mask(slen, decay, out_dtype=jnp.bfloat16)
    jax.block_until_ready(mask_bf16)
    np.testing.assert_allclose(np.asarray(mask_bf16).astype(np.float32),
                               np.asarray(m_ref), rtol=2e-2, atol=2e-2)

    # ---------------- chunkwise-recurrent path (fused kernel) ---------------
    (_, _), (inner_mask, cross_decay, qid, vid) = retnet_rel_pos(
        slen, angle, decay, chunk, chunkwise_recurrent=True)
    jax.block_until_ready((inner_mask, cross_decay, qid, vid))

    bi = jnp.arange(chunk, dtype=jnp.float32)
    raw_ref = jnp.exp(jnp.abs(bi[:, None] - bi[None, :])
                      * decay[:, None, None])                        # (H,C,C)
    scale_ref = jnp.sqrt(raw_ref.sum(-1, keepdims=True))             # (H,C,1)
    inner_ref = raw_ref / scale_ref
    vid_ref = (raw_ref[:, -1] / raw_ref[:, -1].sum(-1, keepdims=True))[:, :, None]
    qid_ref = jnp.exp(decay[:, None] * (bi + 1.0))[:, :, None] / (
        scale_ref / raw_ref[:, -1].sum(-1)[:, None, None])
    cross_ref = jnp.exp(decay * chunk)[:, None, None]
    np.testing.assert_allclose(np.asarray(inner_mask), np.asarray(inner_ref),
                               rtol=1e-5, atol=1e-5)
    np.testing.assert_allclose(np.asarray(qid), np.asarray(qid_ref),
                               rtol=1e-5, atol=1e-5)
    np.testing.assert_allclose(np.asarray(vid), np.asarray(vid_ref),
                               rtol=1e-5, atol=1e-5)
    np.testing.assert_allclose(np.asarray(cross_decay), np.asarray(cross_ref),
                               rtol=1e-5, atol=1e-5)

    # ---------------- recurrent path (plain JAX glue) ------------------------
    (rsin, rcos), rec_decay = retnet_rel_pos(slen, angle, decay, chunk,
                                             activate_recurrent=True)
    jax.block_until_ready((rsin, rcos, rec_decay))
    np.testing.assert_allclose(np.asarray(rec_decay),
                               np.asarray(jnp.exp(decay)),
                               rtol=1e-6, atol=1e-6)

    print("KERNEL_OK")
</pallas_src>

<mosaic_0001>
module attributes {stable_mosaic.version = 11 : i64} {
  func.func @_sincos_kernel(%arg0: i32, %arg1: memref<1x8xf32, #tpu.memory_space<vmem>>, %arg2: memref<8x8xf32, #tpu.memory_space<vmem>>, %arg3: memref<8x8xf32, #tpu.memory_space<vmem>>) attributes {dimension_semantics = [#tpu.dimension_semantics<parallel>], iteration_bounds = array<i64: 1>, scalar_prefetch = 0 : i64, scratch_operands = 0 : i64, tpu.core_type = #tpu.core_type<tc>, window_params = [{pipeline_mode = #tpu.pipeline_mode<synchronous>, transform_indices = @transform_0, window_bounds = array<i64: 1, 8>}, {transform_indices = @transform_1, window_bounds = array<i64: 8, 8>}, {transform_indices = @transform_2, window_bounds = array<i64: 8, 8>}]} {
    %c8_i32 = arith.constant 8 : i32
    %0 = arith.muli %arg0, %c8_i32 : i32
    %1 = tpu.iota {dimensions = array<i32: 0>} : vector<8x8xi32>
    %2 = vector.broadcast %0 : i32 to vector<8x8xi32>
    %3 = arith.addi %1, %2 : vector<8x8xi32>
    %4 = arith.sitofp %3 : vector<8x8xi32> to vector<8x8xf32>
    %c0 = arith.constant 0 : index
    %c0_0 = arith.constant 0 : index
    %5 = vector.load %arg1[%c0, %c0_0] : memref<1x8xf32, #tpu.memory_space<vmem>>, vector<1x8xf32>
    %6 = vector.broadcast %5 : vector<1x8xf32> to vector<8x8xf32>
    %7 = arith.mulf %4, %6 : vector<8x8xf32>
    %8 = math.sin %7 : vector<8x8xf32>
    %c0_1 = arith.constant 0 : index
    %c0_2 = arith.constant 0 : index
    %9 = vector.load %arg2[%c0_1, %c0_2] : memref<8x8xf32, #tpu.memory_space<vmem>>, vector<8x8xf32>
    tpu.vector_store %arg2[%c0_1, %c0_2], %8 {strides = array<i32>} : memref<8x8xf32, #tpu.memory_space<vmem>>, vector<8x8xf32>,
    %10 = math.cos %7 : vector<8x8xf32>
    %c0_3 = arith.constant 0 : index
    %c0_4 = arith.constant 0 : index
    %11 = vector.load %arg3[%c0_3, %c0_4] : memref<8x8xf32, #tpu.memory_space<vmem>>, vector<8x8xf32>
    tpu.vector_store %arg3[%c0_3, %c0_4], %10 {strides = array<i32>} : memref<8x8xf32, #tpu.memory_space<vmem>>, vector<8x8xf32>,
    return
  }
  func.func @transform_0(%arg0: i32) -> (i32, i32) {
    %c0_i32 = arith.constant 0 : i32
    %c0_i32_0 = arith.constant 0 : i32
    %c0_i32_1 = arith.constant 0 : i32
    return %c0_i32, %c0_i32_0 : i32, i32
  }
  func.func @transform_1(%arg0: i32) -> (i32, i32) {
    %c0_i32 = arith.constant 0 : i32
    %c0_i32_0 = arith.constant 0 : i32
    return %arg0, %c0_i32 : i32, i32
  }
  func.func @transform_2(%arg0: i32) -> (i32, i32) {
    %c0_i32 = arith.constant 0 : i32
    %c0_i32_0 = arith.constant 0 : i32
    return %arg0, %c0_i32 : i32, i32
  }
}

</mosaic_0001>

<bundles_post_ra>
// kernel: tpu_custom_call.1
= control target key start
LH: loop header
LB: loop body
LE: loop exit
PB: predicated region body
PF: predicated region fallthrough
CT: control target
= control target key end

     0   :  { %8 = vsyncpa [#allocation3], 0  ;;  %s456_s0 = inlined_call_operand.hbm [shape: f32[1,8], index: 0, kind: input, shape index: {}]   ;;  %s457_s1 = inlined_call_operand.hbm [shape: f32[8,8], index: 1, kind: output, shape index: {0}]   ;;  %s458_s2 = inlined_call_operand.hbm [shape: f32[8,8], index: 2, kind: output, shape index: {1}]  }
   0x1   :  { %9 = vsyncpa [#allocation4], 0 }
   0x2   :  { %10 = vsyncpa [#allocation7], 0  ;;  %s375_s9 = smov [#allocation2]   ;;  %s303_s13 = scalar_lea.hbm %s456_s0, 16 }
   0x3   :  { %s17_s10 = sshll.u32 %s375_s9, 4  ;;  %p304_p0 = scmp.ne.s32.totalorder %s456_s0, %s303_s13  ;;  %s18_s10 = int_to_ptr.vmem [resolvable:$true] %s17_s10 }
   0x4   :  { %p307_p1 = scmp.lt.u32.totalorder %s303_s13, %s456_s0 }
   0x6   :  { %p309_p2 = pnand %p307_p1, %p304_p0 }
   0x8   :  { %312 = shalt.err (!%p309_p2)
}
   0x9   :  { %s313_s18 = scalar_lea.vmem %s18_s10, 16  ;;  %s317_s19 = scalar_lea.vmem %s18_s10, 32 }
   0xa   :  { %p314_p3 = scmp.ne.s32.totalorder %s18_s10, %s313_s18  ;;  %p318_p4 = scmp.lt.s32.totalorder %s18_s10, %s18_s10 }
   0xb   :  { %p319_p5 = scmp.lt.s32.totalorder %s317_s19, %s313_s18 }
   0xd   :  { %p320_p6 = por %p319_p5, %p318_p4 }
   0xf   :  { %p321_p7 = pnand %p320_p6, %p314_p3 }
  0x11   :  { %324 = shalt.err (!%p321_p7)
}
  0x12   :  { %20 = dma.hbm_to_vmem [thread:$0]  %s456_s0, 16, %s18_s10, [#allocation3]  }
  0x13   :  { %369 = dma.done.wait [#allocation3], 16  }
  0x14   :  { %370 = vsyncadd [#allocation3], 4294967280  ;;  %v25_v0 = vlaneseq  ;;  %v277_v3 = vld [vmem:[#allocation2] ss:$0 sm:$0xff]  ;;  %v376_v16 = vmov 683565275  }
  0x15   :  { %v377_v18 = vmov 2475754826   ;;  %v378_v20 = vmov 2131351028   ;;  %v379_v22 = vmov 2102212464  }
  0x16   :  { %v26_v1 = vshrl.u32 %v25_v0, 7  ;;  %v380_v24 = vmov 920167782   ;;  %v381_v31 = vmov 1326507024   ;;  %s382_s0 = smov [#allocation5]  }
  0x17   :  { %s254_s22 = sshll.u32 %s382_s0, 4  ;;  %s383_s23 = smov [#allocation6]   ;;  %s255_s22 = int_to_ptr.vmem [resolvable:$true] %s254_s22 }
  0x18   :  { %v29_v2 = vcvt.s32.f32 %v26_v1  ;;  %s264_s24 = sshll.u32 %s383_s23, 4  ;;  %s325_s25 = scalar_lea.vmem %s255_s22, 128  ;;  %s265_s24 = int_to_ptr.vmem [resolvable:$true] %s264_s24 }
  0x19   :  { %p326_p8 = scmp.ne.s32.totalorder %s255_s22, %s325_s25  ;;  %p330_p9 = scmp.lt.s32.totalorder %s255_s22, %s255_s22 }
  0x1a   :  { %v411_v4 = vmul.f32 %v277_v3, %v29_v2  ;;  %p331_p10 = scmp.lt.s32.totalorder %s325_s25, %s325_s25 }
  0x1c   :  { %v41_v5 = vand.u32 2139095040, %v411_v4  ;;  %v38_v7 = vand.u32 2147483647, %v411_v4  ;;  %vm40_vm7 = vcmp.lt.s32.totalorder %v411_v4, 0  ;;  %vm130_vm15 = vweird.f32 %v411_v4  ;;  %p332_p11 = por %p331_p10, %p330_p9 }
  0x1e   :  { %v42_v6 = vshrl.u32 %v41_v5, 23  ;;  %v45_v10 = vand.u32 8388607, %v38_v7  ;;  %vm39_vm8 = vcmp.le.f32.partialorder %v38_v7, 0.7853982  ;;  %p333_p12 = pnand %p332_p11, %p326_p8 }
  0x20   :  { %v278_v8 = vadd.s32 4294967169, %v42_v6  ;;  %v46_v13 = vor.u32 8388608, %v45_v10 }
  0x22   :  { %v48_v9 = vadd.s32 1, %v278_v8  ;;  %v86_v33 = vshll.u32 %v46_v13, 8 }
  0x24   :  { %vm49_vm0 = vcmp.gt.s32.totalorder %v48_v9, 0 }
  0x25   :  { %v50_v11 = vsel %vm49_vm0, %v48_v9, 0  ;;  %vm142_vm0 = vcmask 64512  }
  0x26   :  { %v52_v12 = vand.u32 31, %v50_v11  ;;  %v51_v14 = vshrl.u32 %v50_v11, 5 }
  0x28   :  { %v53_v15 = vsub.s32 32, %v52_v12  ;;  %v55_v17 = vshll.u32 %v376_v16, %v52_v12  ;;  %v58_v19 = vshll.u32 %v377_v18, %v52_v12  ;;  %v61_v21 = vshll.u32 %v378_v20, %v52_v12 }
  0x29   :  { %v64_v23 = vshll.u32 %v379_v22, %v52_v12  ;;  %v67_v25 = vshll.u32 %v380_v24, %v52_v12  ;;  %vm70_vm1 = vcmp.lt.s32.totalorder %v51_v14, 1  ;;  %vm73_vm2 = vcmp.lt.s32.totalorder %v51_v14, 4 }
  0x2a   :  { %v54_v26 = vshrl.u32 %v376_v16, %v53_v15  ;;  %v56_v27 = vshrl.u32 %v377_v18, %v53_v15  ;;  %v59_v28 = vshrl.u32 %v378_v20, %v53_v15  ;;  %v62_v29 = vshrl.u32 %v379_v22, %v53_v15 }
  0x2b   :  { %v65_v30 = vshrl.u32 %v380_v24, %v53_v15  ;;  %v68_v32 = vshrl.u32 %v381_v31, %v53_v15  ;;  %vm71_vm3 = vcmp.lt.s32.totalorder %v51_v14, 2  ;;  %vm72_vm4 = vcmp.lt.s32.totalorder %v51_v14, 3 }
  0x2c   :  { %v57_v34 = vor.u32 %v56_v27, %v55_v17  ;;  %v60_v35 = vor.u32 %v59_v28, %v58_v19  ;;  %v63_v36 = vor.u32 %v62_v29, %v61_v21 }
  0x2d   :  { %v66_v37 = vor.u32 %v65_v30, %v64_v23  ;;  %v69_v38 = vor.u32 %v68_v32, %v67_v25 }
  0x2e   :  { %v74_v39 = vsel %vm70_vm1, %v54_v26, %v57_v34  ;;  %v75_v40 = vsel %vm73_vm2, %v63_v36, 2102212464  ;;  %v78_v41 = vsel %vm70_vm1, %v57_v34, %v60_v35  ;;  %v82_v42 = vsel %vm70_vm1, %v60_v35, %v63_v36 }
  0x2f   :  { %v76_v43 = vsel %vm72_vm4, %v60_v35, %v75_v40  ;;  %v79_v44 = vsel %vm73_vm2, %v66_v37, 920167782  ;;  %v83_v45 = vsel %vm73_vm2, %v69_v38, 1326507024 }
  0x30   :  { %v80_v46 = vsel %vm72_vm4, %v63_v36, %v79_v44  ;;  %v84_v47 = vsel %vm72_vm4, %v66_v37, %v83_v45  ;;  %v77_v48 = vsel %vm71_vm3, %v74_v39, %v76_v43 }
  0x31   :  { %v81_v49 = vsel %vm71_vm3, %v78_v41, %v80_v46  ;;  %v85_v50 = vsel %vm71_vm3, %v82_v42, %v84_v47  ;;  %v93_v55 = vmul.u32 %v86_v33, %v77_v48 }
  0x32   :  { %v417_v51 = vmul.u32.u64.low %v86_v33, %v85_v50  ;;  %v418_v52 = vmul.u32.u64.high %v86_v33, %v85_v50, %v417_v51  ;;  %v420_v53 = vmul.u32.u64.low %v86_v33, %v81_v49  ;;  %v421_v54 = vmul.u32.u64.high %v86_v33, %v81_v49, %v420_v53 }
  0x34   :  { %vm95_vm5 = vc.u32 %v418_v52, %v420_v53  ;;  %v96_v56 = vadd.s32 1, %v421_v54  ;;  %v94_v3 = vadd.s32 %v420_v53, %v418_v52 }
  0x36   :  { %v97_v57 = vsel %vm95_vm5, %v96_v56, %v421_v54 }
  0x37   :  { %v98_v58 = vadd.s32 %v97_v57, %v93_v55 }
  0x39   :  { %v99_v59 = vadd.s32 536870912, %v98_v58 }
  0x3b   :  { %v100_v60 = vshrl.u32 %v99_v59, 30 }
  0x3d   :  { %v101_v61 = vshll.u32 %v100_v60, 30  ;;  %v124_v17 = vsub.s32 4, %v100_v60 }
  0x3f   :  { %v102_v62 = vsub.s32 %v98_v58, %v101_v61  ;;  %v125_v20 = vsel %vm40_vm7, %v124_v17, %v100_v60 }
  0x40   :  { %v127_v23 = vsel %vm39_vm8, 0, %v125_v20 }
  0x41   :  { %v104_v63 = vsub.s32 0, %v102_v62  ;;  %v131_v24 = vadd.s32 3, %v127_v23  ;;  %v237_v26 = vand.u32 3, %v127_v23 }
  0x43   :  { %v279_v0 = vmin.u32 %v104_v63, %v102_v62  ;;  %v132_v25 = vand.u32 3, %v131_v24  ;;  %vm242_vm10 = vcmp.eq.s32.totalorder %v237_v26, 2  ;;  %vm239_vm12 = vcmp.eq.s32.totalorder %v237_v26, 0 }
  0x44   :  { %vm238_vm14 = vcmp.lt.s32.totalorder %v237_v26, 2 }
  0x45   :  { %v106_v1 = vclz %v279_v0  ;;  %vm137_vm9 = vcmp.eq.s32.totalorder %v132_v25, 2  ;;  %vm134_vm11 = vcmp.eq.s32.totalorder %v132_v25, 0  ;;  %vm133_vm13 = vcmp.lt.s32.totalorder %v132_v25, 2 }
  0x47   :  { %v280_v2 = vadd.s32 4294967294, %v106_v1 }
  0x49   :  { %vm281_vm6 = vcmp.lt.s32.totalorder %v280_v2, 0 }
  0x4a   :  { %v109_v5 = vsel %vm281_vm6, 0, %v280_v2 }
  0x4b   :  { %v110_v6 = vsub.s32 32, %v109_v5  ;;  %v111_v8 = vshll.u32 %v102_v62, %v109_v5  ;;  %v114_v9 = vsub.s32 4294967266, %v109_v5 }
  0x4d   :  { %v112_v10 = vshrl.u32 %v94_v3, %v110_v6  ;;  %v115_v11 = vadd.s32 127, %v114_v9 }
  0x4f   :  { %v113_v12 = vor.u32 %v112_v10, %v111_v8  ;;  %v116_v13 = vshll.u32 %v115_v11, 23 }
  0x51   :  { %v117_v14 = vor.u32 4788187, %v116_v13  ;;  %v120_v15 = vcvt.s32.f32 %v113_v12 }
  0x53   :  { %v118_v16 = vand.u32 2147483647, %v117_v14 }
  0x55   :  { %v121_v18 = vmul.f32 %v120_v15, %v118_v16 }
  0x57   :  { %v122_v19 = vxor.u32 2147483648, %v121_v18 }
  0x59   :  { %v123_v21 = vsel %vm40_vm7, %v122_v19, %v121_v18 }
  0x5a   :  { %v126_v22 = vsel %vm39_vm8, %v411_v4, %v123_v21 }
  0x5b   :  { %299 = vcosq.f32 %v126_v22 }
  0x5c   :  { %301 = vsinq.f32 %v126_v22 }
  0x65   :  { %v300_v27 = vpop.eup %299 }
  0x66   :  { %v302_v28 = vpop.eup %301  ;;  %v138_v29 = vxor.u32 2147483648, %v300_v27 }
  0x67   :  { %v135_v7 = vxor.u32 2147483648, %v302_v28 }
  0x68   :  { %v139_v30 = vsel %vm137_vm9, %v138_v29, %v302_v28  ;;  %v244_v31 = vsel %vm242_vm10, %v138_v29, %v302_v28 }
  0x69   :  { %v136_v32 = vsel %vm134_vm11, %v300_v27, %v135_v7  ;;  %v241_v33 = vsel %vm239_vm12, %v300_v27, %v135_v7 }
  0x6a   :  { %v140_v34 = vsel %vm133_vm13, %v136_v32, %v139_v30  ;;  %v245_v35 = vsel %vm238_vm14, %v241_v33, %v244_v31 }
  0x6b   :  { %v141_v36 = vsel %vm130_vm15, nan, %v140_v34  ;;  %v246_v37 = vsel %vm130_vm15, nan, %v245_v35 }
  0x6c   :  { %143 = vst.msk [vmem:[#allocation5] sm:$0xff] %vm142_vm0, %v141_v36  ;;  %247 = vst.msk [vmem:[#allocation6] sm:$0xff] %vm142_vm0, %v246_v37 }
  0x6d   :  { %336 = shalt.err (!%p333_p12)
}
  0x6e   :  { %s337_s28 = scalar_lea.hbm %s457_s1, 128 }
  0x6f   :  { %p338_p13 = scmp.ne.s32.totalorder %s457_s1, %s337_s28  ;;  %p341_p0 = scmp.lt.u32.totalorder %s337_s28, %s457_s1 }
  0x71   :  { %p343_p1 = pnand %p341_p0, %p338_p13 }
  0x73   :  { %346 = shalt.err (!%p343_p1)
}
  0x74   :  { %257 = dma.vmem_to_hbm [thread:$0]  %s255_s22, 128, %s457_s1, [#allocation4]  }
  0x75   :  { %s347_s7 = scalar_lea.vmem %s265_s24, 128  ;;  %p352_p3 = scmp.lt.s32.totalorder %s265_s24, %s265_s24 }
  0x76   :  { %p348_p2 = scmp.ne.s32.totalorder %s265_s24, %s347_s7  ;;  %p353_p4 = scmp.lt.s32.totalorder %s347_s7, %s347_s7 }
  0x78   :  { %p354_p5 = por %p353_p4, %p352_p3 }
  0x7a   :  { %p355_p6 = pnand %p354_p5, %p348_p2 }
  0x7c   :  { %358 = shalt.err (!%p355_p6)
}
  0x7d   :  { %s359_s10 = scalar_lea.hbm %s458_s2, 128 }
  0x7e   :  { %p360_p7 = scmp.ne.s32.totalorder %s458_s2, %s359_s10  ;;  %p363_p8 = scmp.lt.u32.totalorder %s359_s10, %s458_s2 }
  0x80   :  { %p365_p9 = pnand %p363_p8, %p360_p7 }
  0x82   :  { %368 = shalt.err (!%p365_p9)
}
  0x83   :  { %267 = dma.vmem_to_hbm [thread:$0]  %s265_s24, 128, %s458_s2, [#allocation7]  }
  0x84   :  { %371 = dma.done.wait [#allocation4], 128  }
  0x85   :  { %372 = vsyncadd [#allocation4], 4294967168 }
  0x86   :  { %373 = dma.done.wait [#allocation7], 128  }
  0x87   :  { %374 = vsyncadd [#allocation7], 4294967168 }
  0x88   :  { %274 = vsyncpa [#allocation3], 1 }
  0x89   :  { %275 = vsyncpa [#allocation4], 1 }
  0x8a   :  { %276 = vsyncpa [#allocation7], 1 }

</bundles_post_ra>
